<compile_context>
chip_gen: v5e
topology: v5e:2x2
jax: 0.10.0
libtpu: 0.0.40
codegen_flags: <defaults>
</compile_context>

<pallas_src>
import math

import jax
import jax.numpy as jnp
from jax.experimental import pallas as pl
from jax.experimental.pallas import tpu as pltpu


def _identity_copy_kernel(x_ref, o_ref):
    # Straight tile copy; the whole kernel is HBM-bandwidth bound.
    o_ref[...] = x_ref[...]


_TARGET_BLOCK_BYTES = 8 * 1024 * 1024       # per block, per side
_VMEM_LIMIT_BYTES = 48 * 1024 * 1024        # 4 x block (double-buffered in+out) + slack
_LANE_CANDIDATES = (2048, 1024, 512, 256, 128)
_MIN_GRID_STEPS = 8                          # keep enough steps for v7x dual-TC sharding


def _cdiv(a, b):
    return -(-a // b)


def _round_up(n, m):
    return _cdiv(n, m) * m


def _round_down(n, m):
    return (n // m) * m


def _plan_view(shape, itemsize):
    """Pick a 2D (rows, lane) view of the flattened tensor.

    Prefers a lane width that is a multiple of 128 (wide unmasked vst) while
    keeping the reshape a pure fold of leading dims whenever the native
    trailing dim is already lane-friendly.
    """
    total = math.prod(shape)
    last = shape[-1] if len(shape) > 1 else total
    if len(shape) > 1 and last % 128 == 0:
        return total // last, last                   # fold leading dims only
    if total % 128 == 0:
        for lane in _LANE_CANDIDATES:
            if total % lane == 0:
                return total // lane, lane
    # Awkward sizes: keep the native trailing dim as lanes. lane < 128 means
    # masked partial stores, but tiling below keeps every block VMEM-sized.
    return total // last, last


def _plan_tiles(rows, lane, itemsize):
    """Choose (row_tile, lane_tile). Partial edge blocks are allowed (cdiv grid)."""
    pack = max(8, 32 // max(1, itemsize))    # native sublane packing: 8 f32, 16 bf16, 32 int8

    # Lane tile: full extent when `pack` rows of it still fit one block;
    # otherwise a multiple of 128 (partial edge block is masked and legal).
    if lane * itemsize * pack <= _TARGET_BLOCK_BYTES:
        lane_tile = lane
    else:
        lane_tile = max(128, _round_down(_TARGET_BLOCK_BYTES // (pack * itemsize), 128))

    if rows <= pack:
        row_tile = rows                      # full extent along rows is always legal
    else:
        bytes_per_row = max(1, lane_tile * itemsize)
        rt = max(pack, _round_down(_TARGET_BLOCK_BYTES // bytes_per_row, pack))
        rt = min(rt, _round_up(rows, pack))
        # Keep >= ~_MIN_GRID_STEPS grid steps once each step still moves >= ~1 MiB,
        # so both v7x TensorCores get work.
        if lane_tile == lane and rows * lane * itemsize >= _MIN_GRID_STEPS * (1 << 20):
            rt = min(rt, max(pack, _round_up(_cdiv(rows, _MIN_GRID_STEPS), pack)))
        row_tile = rt

    return row_tile, lane_tile


def _pallas_identity_copy(x):
    """Copy x into a fresh buffer via a lane-dense, double-buffered Pallas kernel."""
    orig_shape = x.shape
    total = math.prod(orig_shape)
    itemsize = jnp.dtype(x.dtype).itemsize

    rows, lane = _plan_view(orig_shape, itemsize)
    row_tile, lane_tile = _plan_tiles(rows, lane, itemsize)

    x2d = x.reshape(rows, lane)
    grid = (_cdiv(rows, row_tile), _cdiv(lane, lane_tile))

    out2d = pl.pallas_call(
        _identity_copy_kernel,
        out_shape=jax.ShapeDtypeStruct((rows, lane), x.dtype),
        grid=grid,
        in_specs=[pl.BlockSpec((row_tile, lane_tile), lambda i, j: (i, j))],
        out_specs=pl.BlockSpec((row_tile, lane_tile), lambda i, j: (i, j)),
        # NOTE: no input_output_aliases -- aliasing a non-donated input forces
        # XLA to insert a full pre-copy (4x HBM traffic). Donating callers
        # should use the default no-op path (identity_pooler returns x).
        cost_estimate=pl.CostEstimate(
            flops=0,
            transcendentals=0,
            bytes_accessed=2 * total * itemsize,
        ),
        compiler_params=pltpu.CompilerParams(
            # Pure-bandwidth copy; every block independent -> megacore-shardable.
            dimension_semantics=("parallel", "parallel"),
            vmem_limit_bytes=_VMEM_LIMIT_BYTES,
        ),
    )(x2d)

    return out2d.reshape(orig_shape)


def identity_pooler(x: jax.Array, *, force_copy: bool = False) -> jax.Array:
    """IdentityPooler.forward: return x unchanged.

    By default this is zero-cost (no kernel, no HBM traffic), exactly matching
    the PyTorch module's semantics.  Set force_copy=True to materialize the
    result into a fresh buffer via the Pallas copy kernel.
    """
    if not force_copy or x.ndim == 0 or x.size == 0:
        return x
    return _pallas_identity_copy(x)


if __name__ == "__main__":
    key = jax.random.PRNGKey(0)
    k0, k1, k2 = jax.random.split(key, 3)

    # Primary case: transformer-pooler style activations (batch=2, seq=8, hidden=32).
    x = jax.random.normal(k0, (2, 8, 32), dtype=jnp.float32)

    # Zero-cost path (true IdentityPooler semantics: same array back).
    y_noop = identity_pooler(x)
    assert y_noop is x

    # Pallas copy path.
    copier = jax.jit(lambda a: identity_pooler(a, force_copy=True))
    y = jax.block_until_ready(copier(x))
    assert y.shape == x.shape
    assert y.dtype == x.dtype
    assert bool(jnp.array_equal(y, x))

    # Awkward (non-128-divisible) shape exercises the masked-lane fallback.
    xa = jax.random.normal(k1, (3, 5, 7), dtype=jnp.float32)
    ya = jax.block_until_ready(jax.jit(lambda a: identity_pooler(a, force_copy=True))(xa))
    assert bool(jnp.array_equal(ya, xa))

    # bf16 exercises the dtype-aware sublane packing (16-row multiples).
    xb = jax.random.normal(k2, (4, 16, 128), dtype=jnp.float32).astype(jnp.bfloat16)
    yb = jax.block_until_ready(jax.jit(lambda a: identity_pooler(a, force_copy=True))(xb))
    assert bool(jnp.array_equal(yb, xb))

    print("KERNEL_OK")
</pallas_src>

<mosaic_0001>
module attributes {stable_mosaic.version = 11 : i64} {
  func.func @_identity_copy_kernel(%arg0: i32, %arg1: i32, %arg2: memref<1x512xf32, #tpu.memory_space<vmem>>, %arg3: memref<1x512xf32, #tpu.memory_space<vmem>>) attributes {dimension_semantics = [#tpu.dimension_semantics<parallel>, #tpu.dimension_semantics<parallel>], iteration_bounds = array<i64: 1, 1>, scalar_prefetch = 0 : i64, scratch_operands = 0 : i64, tpu.core_type = #tpu.core_type<tc>, window_params = [{transform_indices = @transform_0, window_bounds = array<i64: 1, 512>}, {transform_indices = @transform_1, window_bounds = array<i64: 1, 512>}]} {
    %c0 = arith.constant 0 : index
    %c0_0 = arith.constant 0 : index
    %0 = vector.load %arg2[%c0, %c0_0] : memref<1x512xf32, #tpu.memory_space<vmem>>, vector<1x512xf32>
    %c0_1 = arith.constant 0 : index
    %c0_2 = arith.constant 0 : index
    %1 = vector.load %arg3[%c0_1, %c0_2] : memref<1x512xf32, #tpu.memory_space<vmem>>, vector<1x512xf32>
    tpu.vector_store %arg3[%c0_1, %c0_2], %0 {strides = array<i32>} : memref<1x512xf32, #tpu.memory_space<vmem>>, vector<1x512xf32>,
    return
  }
  func.func @transform_0(%arg0: i32, %arg1: i32) -> (i32, i32) {
    %c0_i32 = arith.constant 0 : i32
    return %arg0, %arg1 : i32, i32
  }
  func.func @transform_1(%arg0: i32, %arg1: i32) -> (i32, i32) {
    %c0_i32 = arith.constant 0 : i32
    return %arg0, %arg1 : i32, i32
  }
}

</mosaic_0001>

<bundles_post_ra>
// kernel: _lambda_.1
= control target key start
LH: loop header
LB: loop body
LE: loop exit
PB: predicated region body
PF: predicated region fallthrough
CT: control target
= control target key end

     0   :  { %v9_v0 = vlaneseq  ;;  %s34_s0 = inlined_call_operand.vmem [shape: f32[1,512], index: 0, kind: input, shape index: {}]   ;;  %s35_s1 = inlined_call_operand.vmem [shape: f32[1,512], index: 1, kind: output, shape index: {}]  }
   0x1   :  { %v8_v1 = vld [vmem:[%s34_s0] sm:$0xf] }
   0x2   :  { %vm11_vm0 = vcmp.lt.s32.totalorder %v9_v0, 512 }
   0x3   :  { %13 = vst.msk [vmem:[%s35_s1] sm:$0xf] %vm11_vm0, %v8_v1 }

</bundles_post_ra>
